<compile_context>
chip_gen: v5e
topology: v5e:2x2
jax: 0.10.0
libtpu: 0.0.40
codegen_flags: <defaults>
</compile_context>

<pallas_src>
import functools
import math

import jax
import jax.numpy as jnp
from jax.experimental import pallas as pl
from jax.experimental.pallas import tpu as pltpu

# ----------------------- config (LMConfig-equivalent) -----------------------
DIM = 32                  # config.dim (gating_dim)
N_ROUTED_EXPERTS = 8      # config.n_routed_experts
TOP_K = 2                 # config.num_experts_per_tok
NORM_TOPK_PROB = True     # config.norm_topk_prob
SCORING_FUNC = "softmax"  # config.scoring_func
AUX_LOSS_ALPHA = 0.1      # config.aux_loss_alpha
SEQ_AUX = True            # config.seq_aux

DEFAULT_TOKEN_TILE = 8192  # review: sweep 8192-16384; 8192 is safe everywhere


# ----------------------------- kernel helpers --------------------------------
def _topk_from_logits(logits, m, top_k):
    """Iterative masked argmax over the expert (sublane) axis.

    logits: (E, tm) f32; m: (1, tm) = max(logits, axis=0) (reused as the k=0 max).
    Returns ((K, tm) top logit values, (K, tm) f32 expert indices).
    """
    n_experts = logits.shape[0]
    row = jax.lax.broadcasted_iota(jnp.int32, logits.shape, 0).astype(jnp.float32)
    sentinel = jnp.float32(n_experts)

    vals, idxs = [], []
    work = logits
    v = m
    for k in range(top_k):
        if k > 0:
            v = jnp.max(work, axis=0, keepdims=True)                 # (1, tm)
        # first expert index attaining the max (torch.topk-style tie-break)
        i = jnp.min(jnp.where(work == v, row, sentinel),
                    axis=0, keepdims=True)                           # (1, tm) f32
        vals.append(v)
        idxs.append(i)
        if k + 1 < top_k:
            work = jnp.where(row == i, -jnp.inf, work)
    return jnp.concatenate(vals, axis=0), jnp.concatenate(idxs, axis=0)


def _gate_logits(x, w):
    # (E, H) x (tm, H) -> (E, tm): contract on the hidden dim of both operands
    # (the same dimension_numbers as the official flash-attention kernel),
    # i.e. the MXU transposed-rhs path — no XLU transpose of the x tile.
    return jax.lax.dot_general(w, x, (((1,), (1,)), ((), ())),
                               preferred_element_type=jnp.float32)


# ------------------------------ kernel bodies ---------------------------------
def moe_gate_kernel_train(x_ref, w_ref, topk_w_ref, topk_i_ref, aux_ref, *,
                          top_k, norm_topk_prob, bsz, seq_len):
    tm = x_ref.shape[0]
    n_experts = w_ref.shape[0]
    total_tokens = bsz * seq_len
    base = pl.program_id(0) * tm

    logits = _gate_logits(x_ref[...], w_ref[...])                    # (E, tm)
    # Ragged final tile: zero the padded columns so exp/recip stay finite and
    # the aux partial sums cannot be polluted by garbage reads.
    tok_e = base + jax.lax.broadcasted_iota(jnp.int32, (n_experts, tm), 1)
    logits = jnp.where(tok_e < total_tokens, logits, 0.0)

    m = jnp.max(logits, axis=0, keepdims=True)                       # (1, tm)
    e = jnp.exp(logits - m)                                          # (E, tm)
    inv = 1.0 / jnp.sum(e, axis=0, keepdims=True)                    # (1, tm) exact

    topk_l, topk_if = _topk_from_logits(logits, m, top_k)            # (K, tm)
    s = jnp.exp(topk_l - m) * inv                                    # softmax values
    if top_k > 1 and norm_topk_prob:
        s = s * (1.0 / (jnp.sum(s, axis=0, keepdims=True) + 1e-20))
    topk_w_ref[...] = s
    topk_i_ref[...] = topk_if.astype(jnp.int32)

    # ---- aux-loss partials: per-(tile, expert, batch) sums of softmax scores ----
    # Batch one-hot mask built with comparisons only (no integer division);
    # the per-token softmax denominator is folded into the mask.
    b_rows = bsz if bsz >= 8 else 8
    tok_b = base + jax.lax.broadcasted_iota(jnp.int32, (b_rows, tm), 1)
    b_lo = jax.lax.broadcasted_iota(jnp.int32, (b_rows, tm), 0) * seq_len
    in_batch = (tok_b >= b_lo) & (tok_b < (b_lo + seq_len))          # (b_rows, tm)
    mask = in_batch.astype(jnp.float32) * inv
    partial = jax.lax.dot_general(e, mask, (((1,), (1,)), ((), ())),
                                  preferred_element_type=jnp.float32)  # (E, b_rows)
    aux_ref[0] = partial[:, :bsz]


def moe_gate_kernel_infer(x_ref, w_ref, topk_w_ref, topk_i_ref, *,
                          top_k, norm_topk_prob):
    logits = _gate_logits(x_ref[...], w_ref[...])                    # (E, tm)
    m = jnp.max(logits, axis=0, keepdims=True)                       # (1, tm)
    topk_l, topk_if = _topk_from_logits(logits, m, top_k)            # (K, tm)
    topk_e = jnp.exp(topk_l - m)
    if top_k > 1 and norm_topk_prob:
        # Global softmax denominator cancels after top-k renormalisation:
        # skip the full (E, tm) exp/sum/divide.
        topk_w = topk_e * (1.0 / (jnp.sum(topk_e, axis=0, keepdims=True) + 1e-20))
    else:
        e = jnp.exp(logits - m)
        topk_w = topk_e * (1.0 / jnp.sum(e, axis=0, keepdims=True))
    topk_w_ref[...] = topk_w
    topk_i_ref[...] = topk_if.astype(jnp.int32)


# --------------------------------- wrapper ------------------------------------
def moe_gate_forward(hidden_states, weight, *, top_k=TOP_K,
                     norm_topk_prob=NORM_TOPK_PROB, alpha=AUX_LOSS_ALPHA,
                     seq_aux=SEQ_AUX, training=True,
                     token_tile=DEFAULT_TOKEN_TILE):
    assert SCORING_FUNC == "softmax"
    bsz, seq_len, h = hidden_states.shape
    n_experts, h_w = weight.shape
    assert h == h_w
    T = bsz * seq_len

    x2d = hidden_states.reshape(T, h)
    # Match dtypes so a bf16 activation path uses the native bf16 MXU route.
    if weight.dtype != x2d.dtype:
        weight = weight.astype(x2d.dtype)

    # Generation-aware token-tile cap (v7x: 64 MiB VMEM/TC -> smaller cap).
    try:
        vmem_cap = int(pltpu.get_tpu_info().vmem_capacity_bytes)
    except Exception:
        vmem_cap = 64 << 20
    tm_cap = 16384 if vmem_cap <= (64 << 20) else 32768

    tm = max(128, (int(token_tile) // 128) * 128)
    tm = min(tm, tm_cap)
    tm = min(tm, ((T + 127) // 128) * 128)    # don't over-allocate for tiny inputs
    grid = (pl.cdiv(T, tm),)                  # ragged last tile handled by masking
    num_tiles = grid[0]

    need_aux = bool(training) and (alpha > 0.0)

    # VMEM budget: double-buffered lane-padded x tile + f32 temporaries + slack.
    h_lanes = ((h + 127) // 128) * 128
    x_buf = tm * h_lanes * x2d.dtype.itemsize
    temps = 24 * 8 * tm * 4
    est = 2 * x_buf + temps + (4 << 20)
    vmem_limit = int(min(max(est, 32 << 20), int(vmem_cap * 0.75)))

    in_specs = [pl.BlockSpec((tm, h), lambda i: (i, 0)),            # token tile
                pl.BlockSpec((n_experts, h), lambda i: (0, 0))]     # resident gate W
    out_shapes = [jax.ShapeDtypeStruct((top_k, T), jnp.float32),
                  jax.ShapeDtypeStruct((top_k, T), jnp.int32)]
    out_specs = [pl.BlockSpec((top_k, tm), lambda i: (0, i)),
                 pl.BlockSpec((top_k, tm), lambda i: (0, i))]
    if need_aux:
        out_shapes.append(
            jax.ShapeDtypeStruct((num_tiles, n_experts, bsz), jnp.float32))
        out_specs.append(pl.BlockSpec((1, n_experts, bsz), lambda i: (i, 0, 0)))
        kernel = functools.partial(moe_gate_kernel_train, top_k=top_k,
                                   norm_topk_prob=norm_topk_prob,
                                   bsz=bsz, seq_len=seq_len)
    else:
        kernel = functools.partial(moe_gate_kernel_infer, top_k=top_k,
                                   norm_topk_prob=norm_topk_prob)

    flops = 2 * T * h * n_experts + (2 * T * n_experts * bsz if need_aux else 0)
    bytes_acc = (T * h * x2d.dtype.itemsize + n_experts * h * weight.dtype.itemsize
                 + T * top_k * 8
                 + (num_tiles * n_experts * bsz * 4 if need_aux else 0))
    trans = T * n_experts if need_aux else T * top_k
    cost = pl.CostEstimate(flops=int(flops), transcendentals=int(trans),
                           bytes_accessed=int(bytes_acc))

    outs = pl.pallas_call(
        kernel,
        out_shape=tuple(out_shapes),
        grid_spec=pltpu.PrefetchScalarGridSpec(
            num_scalar_prefetch=0,
            grid=grid,
            in_specs=in_specs,
            out_specs=tuple(out_specs)),
        compiler_params=pltpu.CompilerParams(
            dimension_semantics=("parallel",),
            vmem_limit_bytes=vmem_limit),
        cost_estimate=cost,
    )(x2d, weight)

    if need_aux:
        topk_w_kt, topk_i_kt, aux_partials = outs
    else:
        topk_w_kt, topk_i_kt = outs
        aux_partials = None

    # tiny transposes back to the PyTorch-facing (T, K) layout
    topk_weight = topk_w_kt.T                                        # (T, K)
    topk_idx = topk_i_kt.T                                           # (T, K)

    # -------- aux loss from the in-kernel partial sums (plain JAX glue) --------
    if need_aux:
        sums_eb = aux_partials.sum(axis=0)                           # (E, bsz)
        topk_idx_for_aux = topk_idx.reshape(bsz, -1)                 # (bsz, S*K)
        if seq_aux:
            scores_seq_mean = (sums_eb / seq_len).T                  # (bsz, E)
            batch_ix = jnp.repeat(jnp.arange(bsz), seq_len * top_k)
            ce = jnp.zeros((bsz, n_experts), jnp.float32).at[
                batch_ix, topk_idx_for_aux.reshape(-1)].add(1.0)
            ce = ce / (seq_len * top_k / n_experts)
            aux_loss = (ce * scores_seq_mean).sum(axis=1).mean() * alpha
        else:
            mask_ce = jax.nn.one_hot(topk_idx_for_aux.reshape(-1), n_experts)
            ce = mask_ce.mean(axis=0)
            Pi = sums_eb.sum(axis=1) / T                             # (E,)
            fi = ce * n_experts
            aux_loss = (Pi * fi).sum() * alpha
    else:
        aux_loss = jnp.float32(0.0)

    return topk_idx, topk_weight, aux_loss


# ------------------------------ param init ------------------------------------
def init_gate_weight(key, n_experts, dim):
    # kaiming_uniform_(a=sqrt(5)) on a (n_experts, dim) matrix -> bound 1/sqrt(fan_in)
    bound = 1.0 / math.sqrt(dim)
    return jax.random.uniform(key, (n_experts, dim), jnp.float32,
                              minval=-bound, maxval=bound)


# ---------------------------------- main ---------------------------------------
if __name__ == "__main__":
    key = jax.random.PRNGKey(0)
    k_x, k_w = jax.random.split(key)

    bsz, seq_len = 2, 8
    hidden_states = jax.random.normal(k_x, (bsz, seq_len, DIM), jnp.float32)
    weight = init_gate_weight(k_w, N_ROUTED_EXPERTS, DIM)

    # training path (aux-loss partials computed in-kernel)
    topk_idx, topk_weight, aux_loss = moe_gate_forward(
        hidden_states, weight, training=True)
    jax.block_until_ready((topk_idx, topk_weight, aux_loss))

    # inference path (no full softmax, no aux output)
    topk_idx_inf, topk_weight_inf, aux_loss_inf = moe_gate_forward(
        hidden_states, weight, training=False)
    jax.block_until_ready((topk_idx_inf, topk_weight_inf, aux_loss_inf))

    # ---------------- pure-JAX reference check ----------------
    x2d = hidden_states.reshape(-1, DIM)
    scores_ref = jax.nn.softmax(x2d @ weight.T, axis=-1)
    ref_w, ref_i = jax.lax.top_k(scores_ref, TOP_K)
    ref_w_n = ref_w / (ref_w.sum(-1, keepdims=True) + 1e-20)

    assert jnp.allclose(jnp.sort(topk_weight, axis=-1),
                        jnp.sort(ref_w_n, axis=-1), atol=1e-5)
    assert jnp.allclose(jnp.sort(topk_weight_inf, axis=-1),
                        jnp.sort(ref_w_n, axis=-1), atol=1e-5)
    assert jnp.all(jnp.sort(topk_idx, axis=-1) == jnp.sort(ref_i, axis=-1))
    assert jnp.all(jnp.sort(topk_idx_inf, axis=-1) == jnp.sort(ref_i, axis=-1))

    # reference seq_aux loss (order-invariant in the indices)
    scores_bse = scores_ref.reshape(bsz, seq_len, N_ROUTED_EXPERTS)
    batch_ix = jnp.repeat(jnp.arange(bsz), seq_len * TOP_K)
    ce_ref = jnp.zeros((bsz, N_ROUTED_EXPERTS), jnp.float32).at[
        batch_ix, ref_i.reshape(-1)].add(1.0)
    ce_ref = ce_ref / (seq_len * TOP_K / N_ROUTED_EXPERTS)
    aux_ref = (ce_ref * scores_bse.mean(axis=1)).sum(axis=1).mean() * AUX_LOSS_ALPHA
    assert jnp.allclose(aux_loss, aux_ref, atol=1e-5, rtol=1e-4)
    assert float(aux_loss_inf) == 0.0

    print("KERNEL_OK")
</pallas_src>

<mosaic_0001>
module attributes {stable_mosaic.version = 11 : i64} {
  func.func @moe_gate_kernel_train(%arg0: i32, %arg1: memref<128x32xf32, #tpu.memory_space<vmem>>, %arg2: memref<8x32xf32, #tpu.memory_space<vmem>>, %arg3: memref<2x128xf32, #tpu.memory_space<vmem>>, %arg4: memref<2x128xi32, #tpu.memory_space<vmem>>, %arg5: memref<1x8x2xf32, #tpu.memory_space<vmem>>) attributes {dimension_semantics = [#tpu.dimension_semantics<parallel>], iteration_bounds = array<i64: 1>, scalar_prefetch = 0 : i64, scratch_operands = 0 : i64, tpu.core_type = #tpu.core_type<tc>, window_params = [{transform_indices = @transform_0, window_bounds = array<i64: 128, 32>}, {pipeline_mode = #tpu.pipeline_mode<synchronous>, transform_indices = @transform_1, window_bounds = array<i64: 8, 32>}, {transform_indices = @transform_2, window_bounds = array<i64: 2, 128>}, {transform_indices = @transform_3, window_bounds = array<i64: 2, 128>}, {transform_indices = @transform_4, window_bounds = array<i64: 1, 8, 2>}]} {
    %c128_i32 = arith.constant 128 : i32
    %0 = arith.muli %arg0, %c128_i32 : i32
    %c0 = arith.constant 0 : index
    %c0_0 = arith.constant 0 : index
    %1 = vector.load %arg1[%c0, %c0_0] : memref<128x32xf32, #tpu.memory_space<vmem>>, vector<128x32xf32>
    %c0_1 = arith.constant 0 : index
    %c0_2 = arith.constant 0 : index
    %2 = vector.load %arg2[%c0_1, %c0_2] : memref<8x32xf32, #tpu.memory_space<vmem>>, vector<8x32xf32>
    %cst = arith.constant dense<0.000000e+00> : vector<8x128xf32>
    %3 = tpu.matmul %2, %1, %cst {dimension_numbers = #tpu.dot_dimension_numbers<[1], [1], [0], [0], [0, 0, 1, 0], [], []>} : vector<8x32xf32>, vector<128x32xf32>, vector<8x128xf32> -> vector<8x128xf32>
    %4 = tpu.iota {dimensions = array<i32: 1>} : vector<8x128xi32>
    %5 = vector.broadcast %0 : i32 to vector<8x128xi32>
    %6 = arith.addi %5, %4 : vector<8x128xi32>
    %c16_i32 = arith.constant 16 : i32
    %7 = vector.broadcast %c16_i32 : i32 to vector<8x128xi32>
    %8 = arith.cmpi slt, %6, %7 : vector<8x128xi32>
    %cst_3 = arith.constant 0.000000e+00 : f32
    %9 = vector.broadcast %cst_3 : f32 to vector<8x128xf32>
    %10 = arith.select %8, %3, %9 : vector<8x128xi1>, vector<8x128xf32>
    %cst_4 = arith.constant dense<0xFF800000> : vector<128xf32>
    %11 = vector.multi_reduction <maximumf>, %10, %cst_4 [0] : vector<8x128xf32> to vector<128xf32>
    %12 = vector.shape_cast %11 : vector<128xf32> to vector<1x128xf32>
    %13 = vector.broadcast %12 : vector<1x128xf32> to vector<8x128xf32>
    %14 = arith.subf %10, %13 : vector<8x128xf32>
    %15 = math.exp %14 : vector<8x128xf32>
    %cst_5 = arith.constant dense<0.000000e+00> : vector<128xf32>
    %16 = vector.multi_reduction <add>, %15, %cst_5 [0] : vector<8x128xf32> to vector<128xf32>
    %17 = vector.shape_cast %16 : vector<128xf32> to vector<1x128xf32>
    %cst_6 = arith.constant 1.000000e+00 : f32
    %18 = vector.broadcast %cst_6 : f32 to vector<1x128xf32>
    %19 = arith.divf %18, %17 : vector<1x128xf32>
    %20 = tpu.iota {dimensions = array<i32: 0>} : vector<8x128xi32>
    %21 = arith.sitofp %20 : vector<8x128xi32> to vector<8x128xf32>
    %22 = vector.broadcast %12 : vector<1x128xf32> to vector<8x128xf32>
    %23 = arith.cmpf oeq, %10, %22 : vector<8x128xf32>
    %cst_7 = arith.constant 8.000000e+00 : f32
    %24 = vector.broadcast %cst_7 : f32 to vector<8x128xf32>
    %25 = arith.select %23, %21, %24 : vector<8x128xi1>, vector<8x128xf32>
    %cst_8 = arith.constant dense<0x7F800000> : vector<128xf32>
    %26 = vector.multi_reduction <minimumf>, %25, %cst_8 [0] : vector<8x128xf32> to vector<128xf32>
    %27 = vector.shape_cast %26 : vector<128xf32> to vector<1x128xf32>
    %28 = vector.broadcast %27 : vector<1x128xf32> to vector<8x128xf32>
    %29 = arith.cmpf oeq, %21, %28 : vector<8x128xf32>
    %cst_9 = arith.constant 0xFF800000 : f32
    %30 = vector.broadcast %cst_9 : f32 to vector<8x128xf32>
    %31 = arith.select %29, %30, %10 : vector<8x128xi1>, vector<8x128xf32>
    %cst_10 = arith.constant dense<0xFF800000> : vector<128xf32>
    %32 = vector.multi_reduction <maximumf>, %31, %cst_10 [0] : vector<8x128xf32> to vector<128xf32>
    %33 = vector.shape_cast %32 : vector<128xf32> to vector<1x128xf32>
    %34 = vector.broadcast %33 : vector<1x128xf32> to vector<8x128xf32>
    %35 = arith.cmpf oeq, %31, %34 : vector<8x128xf32>
    %cst_11 = arith.constant 8.000000e+00 : f32
    %36 = vector.broadcast %cst_11 : f32 to vector<8x128xf32>
    %37 = arith.select %35, %21, %36 : vector<8x128xi1>, vector<8x128xf32>
    %cst_12 = arith.constant dense<0x7F800000> : vector<128xf32>
    %38 = vector.multi_reduction <minimumf>, %37, %cst_12 [0] : vector<8x128xf32> to vector<128xf32>
    %39 = vector.shape_cast %38 : vector<128xf32> to vector<1x128xf32>
    %40 = tpu.concatenate %12, %33 in 0 : vector<1x128xf32>, vector<1x128xf32> -> vector<2x128xf32>
    %41 = tpu.concatenate %27, %39 in 0 : vector<1x128xf32>, vector<1x128xf32> -> vector<2x128xf32>
    %42 = vector.broadcast %12 : vector<1x128xf32> to vector<2x128xf32>
    %43 = arith.subf %40, %42 : vector<2x128xf32>
    %44 = math.exp %43 : vector<2x128xf32>
    %45 = vector.broadcast %19 : vector<1x128xf32> to vector<2x128xf32>
    %46 = arith.mulf %44, %45 : vector<2x128xf32>
    %cst_13 = arith.constant dense<0.000000e+00> : vector<128xf32>
    %47 = vector.multi_reduction <add>, %46, %cst_13 [0] : vector<2x128xf32> to vector<128xf32>
    %48 = vector.shape_cast %47 : vector<128xf32> to vector<1x128xf32>
    %cst_14 = arith.constant 9.99999968E-21 : f32
    %49 = vector.broadcast %cst_14 : f32 to vector<1x128xf32>
    %50 = arith.addf %48, %49 : vector<1x128xf32>
    %cst_15 = arith.constant 1.000000e+00 : f32
    %51 = vector.broadcast %cst_15 : f32 to vector<1x128xf32>
    %52 = arith.divf %51, %50 : vector<1x128xf32>
    %53 = vector.broadcast %52 : vector<1x128xf32> to vector<2x128xf32>
    %54 = arith.mulf %46, %53 : vector<2x128xf32>
    %c0_16 = arith.constant 0 : index
    %c0_17 = arith.constant 0 : index
    %55 = vector.load %arg3[%c0_16, %c0_17] : memref<2x128xf32, #tpu.memory_space<vmem>>, vector<2x128xf32>
    tpu.vector_store %arg3[%c0_16, %c0_17], %54 {strides = array<i32>} : memref<2x128xf32, #tpu.memory_space<vmem>>, vector<2x128xf32>,
    %56 = arith.fptosi %41 : vector<2x128xf32> to vector<2x128xi32>
    %c0_18 = arith.constant 0 : index
    %c0_19 = arith.constant 0 : index
    %57 = vector.load %arg4[%c0_18, %c0_19] : memref<2x128xi32, #tpu.memory_space<vmem>>, vector<2x128xi32>
    tpu.vector_store %arg4[%c0_18, %c0_19], %56 {strides = array<i32>} : memref<2x128xi32, #tpu.memory_space<vmem>>, vector<2x128xi32>,
    %58 = tpu.iota {dimensions = array<i32: 1>} : vector<8x128xi32>
    %59 = vector.broadcast %0 : i32 to vector<8x128xi32>
    %60 = arith.addi %59, %58 : vector<8x128xi32>
    %61 = tpu.iota {dimensions = array<i32: 0>} : vector<8x128xi32>
    %c8_i32 = arith.constant 8 : i32
    %62 = vector.broadcast %c8_i32 : i32 to vector<8x128xi32>
    %63 = arith.muli %61, %62 : vector<8x128xi32>
    %64 = arith.cmpi sge, %60, %63 : vector<8x128xi32>
    %c8_i32_20 = arith.constant 8 : i32
    %65 = vector.broadcast %c8_i32_20 : i32 to vector<8x128xi32>
    %66 = arith.addi %63, %65 : vector<8x128xi32>
    %67 = arith.cmpi slt, %60, %66 : vector<8x128xi32>
    %68 = arith.andi %64, %67 : vector<8x128xi1>
    %69 = arith.extui %68 : vector<8x128xi1> to vector<8x128xi32>
    %70 = arith.sitofp %69 : vector<8x128xi32> to vector<8x128xf32>
    %71 = vector.broadcast %19 : vector<1x128xf32> to vector<8x128xf32>
    %72 = arith.mulf %70, %71 : vector<8x128xf32>
    %cst_21 = arith.constant dense<0.000000e+00> : vector<8x8xf32>
    %73 = tpu.matmul %15, %72, %cst_21 {dimension_numbers = #tpu.dot_dimension_numbers<[1], [1], [0], [0], [0, 0, 1, 0], [], []>} : vector<8x128xf32>, vector<8x128xf32>, vector<8x8xf32> -> vector<8x8xf32>
    %74 = vector.extract_strided_slice %73 {offsets = [0, 0], sizes = [8, 2], strides = [1, 1]} : vector<8x8xf32> to vector<8x2xf32>
    %c0_22 = arith.constant 0 : index
    %c0_23 = arith.constant 0 : index
    %c0_24 = arith.constant 0 : index
    %75 = vector.load %arg5[%c0_22, %c0_23, %c0_24] : memref<1x8x2xf32, #tpu.memory_space<vmem>>, vector<1x8x2xf32>
    %76 = vector.shape_cast %75 : vector<1x8x2xf32> to vector<8x2xf32>
    %77 = vector.shape_cast %74 : vector<8x2xf32> to vector<1x8x2xf32>
    tpu.vector_store %arg5[%c0_22, %c0_23, %c0_24], %77 {strides = array<i32>} : memref<1x8x2xf32, #tpu.memory_space<vmem>>, vector<1x8x2xf32>,
    return
  }
  func.func @transform_0(%arg0: i32) -> (i32, i32) {
    %c0_i32 = arith.constant 0 : i32
    %c0_i32_0 = arith.constant 0 : i32
    return %arg0, %c0_i32 : i32, i32
  }
  func.func @transform_1(%arg0: i32) -> (i32, i32) {
    %c0_i32 = arith.constant 0 : i32
    %c0_i32_0 = arith.constant 0 : i32
    %c0_i32_1 = arith.constant 0 : i32
    return %c0_i32, %c0_i32_0 : i32, i32
  }
  func.func @transform_2(%arg0: i32) -> (i32, i32) {
    %c0_i32 = arith.constant 0 : i32
    %c0_i32_0 = arith.constant 0 : i32
    return %c0_i32, %arg0 : i32, i32
  }
  func.func @transform_3(%arg0: i32) -> (i32, i32) {
    %c0_i32 = arith.constant 0 : i32
    %c0_i32_0 = arith.constant 0 : i32
    return %c0_i32, %arg0 : i32, i32
  }
  func.func @transform_4(%arg0: i32) -> (i32, i32, i32) {
    %c0_i32 = arith.constant 0 : i32
    %c0_i32_0 = arith.constant 0 : i32
    %c0_i32_1 = arith.constant 0 : i32
    return %arg0, %c0_i32, %c0_i32_0 : i32, i32, i32
  }
}

</mosaic_0001>

<bundles_post_ra>
// kernel: tpu_custom_call.1
= control target key start
LH: loop header
LB: loop body
LE: loop exit
PB: predicated region body
PF: predicated region fallthrough
CT: control target
= control target key end

     0   :  { %10 = vsyncpa [#allocation3], 0  ;;  %s515_s0 = inlined_call_operand.hbm [shape: f32[16,32], index: 0, kind: input, shape index: {}]   ;;  %s516_s1 = inlined_call_operand.hbm [shape: f32[8,32], index: 1, kind: input, shape index: {}]   ;;  %s517_s2 = inlined_call_operand.hbm [shape: f32[2,16], index: 2, kind: output, shape index: {0}]   ;;  %s518_s3 = inlined_call_operand.hbm [shape: s32[2,16], index: 3, kind: output, shape index: {1}]   ;;  %s519_s4 = inlined_call_operand.vmem [shape: f32[1,8,2], index: 4, kind: output, shape index: {2}]  }
   0x1   :  { %11 = vsyncpa [#allocation6], 0 }
   0x2   :  { %12 = vsyncpa [#allocation4], 0 }
   0x3   :  { %13 = vsyncpa [#allocation9], 0 }
   0x4   :  { %17 = vsyncadd [#allocation3], 1792  ;;  %s18_s17 = sshll.u32 %s515_s0, 4  ;;  %s444_s18 = smov [#allocation2]   ;;  %s19_s17 = int_to_ptr.hbm [resolvable:$true] %s18_s17 }
   0x5   :  { %s20_s19 = sshll.u32 %s444_s18, 4  ;;  %s32_s22 = sshll.u32 %s516_s1, 4  ;;  %s21_s19 = int_to_ptr.vmem [resolvable:$true] %s20_s19  ;;  %s33_s22 = int_to_ptr.hbm [resolvable:$true] %s32_s22 }
   0x6   :  { %s445_s23 = smov 128   ;;  %s446_s24 = smov 8  }
   0x7   :  { %26 = dma.hbm_to_vmem [thread:$0]  %s19_s17, 256, %s21_s19, [#allocation3], %s445_s23, %s445_s23, %s446_s24  }
   0x8   :  { %s447_s25 = smov [#allocation5]  }
   0x9   :  { %s34_s26 = sshll.u32 %s447_s25, 4  ;;  %s35_s26 = int_to_ptr.vmem [resolvable:$true] %s34_s26 }
   0xa   :  { %37 = dma.hbm_to_vmem [thread:$0]  %s33_s22, 128, %s35_s26, [#allocation6]  }
   0xb   :  { %436 = dma.done.wait [#allocation3], 2048  }
   0xc   :  { %437 = vsyncadd [#allocation3], 4294965248 }
   0xd   :  { %438 = dma.done.wait [#allocation6], 128  }
   0xe   :  { %439 = vsyncadd [#allocation6], 4294967168  ;;  %vm64_vm0 = vcmask 261120   ;;  %v62_v0 = vld [vmem:[#allocation2 + $0x78] sm:$0xff]  ;;  %v61_v1 = vld [vmem:[#allocation2 + $0x70] sm:$0xff]  ;;  %v136_v17 = vlaneseq  ;;  %vm199_vm4 = vcmask 1040384  }
   0xf   :  { %302 = vmatpush.xpose.msk.msra.mxu0 %vm64_vm0, %v62_v0  ;;  %v60_v2 = vld [vmem:[#allocation2 + $0x68] sm:$0xff]  ;;  %v59_v3 = vld [vmem:[#allocation2 + $0x60] sm:$0xff]  ;;  %v58_v4 = vld [vmem:[#allocation2 + $0x58] sm:$0xff]  ;;  %vm206_vm13 = vcmask 1041408   ;;  %s449_s0 = smov [#allocation8]   ;;  %s282_s29 = sshll.u32 %s518_s3, 4  ;;  %s283_s29 = int_to_ptr.hbm [resolvable:$true] %s282_s29 }
  0x10   :  { %v57_v5 = vld [vmem:[#allocation2 + $0x50] sm:$0xff]  ;;  %v56_v6 = vld [vmem:[#allocation2 + $0x48] sm:$0xff]  ;;  %v55_v7 = vld [vmem:[#allocation2 + $0x40] sm:$0xff]  ;;  %v137_v18 = vand.u32 127, %v136_v17  ;;  %v173_v24 = vshrl.u32 %v136_v17, 7  ;;  %s280_s1 = sshll.u32 %s449_s0, 4  ;;  %s281_s1 = int_to_ptr.vmem [resolvable:$true] %s280_s1 }
  0x11   :  { %v54_v8 = vld [vmem:[#allocation2 + $0x38] sm:$0xff]  ;;  %v53_v9 = vld [vmem:[#allocation2 + $0x30] sm:$0xff]  ;;  %v52_v10 = vld [vmem:[#allocation2 + $0x28] sm:$0xff]  ;;  %s450_s3 = smov [#allocation7]   ;;  %s271_s7 = sshll.u32 %s517_s2, 4  ;;  %s272_s7 = int_to_ptr.hbm [resolvable:$true] %s271_s7 }
  0x12   :  { %v51_v11 = vld [vmem:[#allocation2 + $0x20] sm:$0xff]  ;;  %v50_v12 = vld [vmem:[#allocation2 + $0x18] sm:$0xff]  ;;  %v49_v13 = vld [vmem:[#allocation2 + $0x10] sm:$0xff]  ;;  %vm140_vm1 = vcmp.lt.s32.totalorder %v137_v18, 16  ;;  %v174_v27 = vcvt.s32.f32 %v173_v24  ;;  %v234_v50 = vmul.u32 8, %v173_v24  ;;  %s269_s30 = sshll.u32 %s450_s3, 4  ;;  %s270_s30 = int_to_ptr.vmem [resolvable:$true] %s269_s30 }
  0x13   :  { %303 = vmatpush.xpose.msk.msra.mxu0 %vm64_vm0, %v61_v1  ;;  %v48_v14 = vld [vmem:[#allocation2 + $0x8] sm:$0xff]  ;;  %v47_v15 = vld [vmem:[#allocation2] sm:$0xff] }
  0x14   :  { %v63_v16 = vld [vmem:[#allocation5] sm:$0xff]  ;;  %v236_v53 = vadd.s32 8, %v234_v50  ;;  %vm235_vm6 = vcmp.ge.s32.totalorder %v137_v18, %v234_v50 }
  0x16   :  { %vm237_vm7 = vcmp.lt.s32.totalorder %v137_v18, %v236_v53 }
  0x17   :  { %304 = vmatpush.xpose.msk.msra.mxu0 %vm64_vm0, %v60_v2  ;;  %vm238_vm9 = vmand %vm235_vm6, %vm237_vm7 }
  0x1b   :  { %305 = vmatpush.xpose.msk.msra.mxu0 %vm64_vm0, %v59_v3 }
  0x1f   :  { %306 = vmatpush.xpose.msk.msra.mxu0 %vm64_vm0, %v58_v4 }
  0x23   :  { %307 = vmatpush.xpose.msk.msra.mxu0 %vm64_vm0, %v57_v5 }
  0x27   :  { %308 = vmatpush.xpose.msk.msra.mxu0 %vm64_vm0, %v56_v6  ;;  %v448_v6 = vmov 0.0  }
  0x2b   :  { %309 = vmatpush.xpose.msk.msra.mxu0 %vm64_vm0, %v55_v7  ;;  %v319_v7 = vsel %vm238_vm9, 1.0, %v448_v6 }
  0x2f   :  { %310 = vmatpush.xpose.msk.msra.mxu0 %vm64_vm0, %v54_v8 }
  0x33   :  { %311 = vmatpush.xpose.msk.msra.mxu0 %vm64_vm0, %v53_v9 }
  0x37   :  { %312 = vmatpush.xpose.msk.msra.mxu0 %vm64_vm0, %v52_v10 }
  0x3b   :  { %313 = vmatpush.xpose.msk.msra.mxu0 %vm64_vm0, %v51_v11 }
  0x3f   :  { %314 = vmatpush.xpose.msk.msra.mxu0 %vm64_vm0, %v50_v12 }
  0x43   :  { %315 = vmatpush.xpose.msk.msra.mxu0 %vm64_vm0, %v49_v13 }
  0x47   :  { %316 = vmatpush.xpose.msk.msra.mxu0 %vm64_vm0, %v48_v14 }
  0x4b   :  { %317 = vmatpush.xpose.msk.msra.mxu0 %vm64_vm0, %v47_v15 }
  0x4e   :  { %318 = vmatmul.msk.f32.vlgmr.msra.gmra.mxu0 %vm64_vm0, %v63_v16 }
  0xcb   :  { %v133_v19 = vpop.f32.mrf.mxu0 }
  0xcc   :  { %v141_v20 = vsel %vm140_vm1, %v133_v19, 0.0 }
  0xcd   :  { %v142_v21 = vrot.slane %v141_v20, 4 }
  0xcf   :  { %v143_v22 = vmax.f32 %v141_v20, %v142_v21 }
  0xd1   :  { %v144_v23 = vrot.slane %v143_v22, 2 }
  0xd3   :  { %v145_v25 = vmax.f32 %v143_v22, %v144_v23 }
  0xd5   :  { %v146_v26 = vrot.slane %v145_v25, 1 }
  0xd7   :  { %v147_v28 = vmax.f32 %v145_v25, %v146_v26 }
  0xd9   :  { %v148_v29 = vsub.f32 %v141_v20, %v147_v28  ;;  %vm175_vm2 = vcmp.eq.f32.partialorder %v141_v20, %v147_v28 }
  0xda   :  { %v176_v30 = vsel %vm175_vm2, %v174_v27, 8.0 }
  0xdb   :  { %v149_v31 = vmul.f32 1.442695, %v148_v29  ;;  %v177_v32 = vrot.slane %v176_v30, 4 }
  0xdd   :  { %332 = vpow2.f32 %v149_v31  ;;  %v178_v33 = vmin.f32 %v176_v30, %v177_v32 }
  0xdf   :  { %v179_v34 = vrot.slane %v178_v33, 2 }
  0xe1   :  { %v180_v35 = vmin.f32 %v178_v33, %v179_v34 }
  0xe3   :  { %v499_v36 = vpop.eup %332  ;;  %v181_v37 = vrot.slane %v180_v35, 1 }
  0xe4   :  { %v151_v38 = vrot.slane %v499_v36, 4 }
  0xe5   :  { %v182_v39 = vmin.f32 %v180_v35, %v181_v37 }
  0xe6   :  { %v152_v40 = vadd.f32 %v499_v36, %v151_v38 }
  0xe7   :  { %vm183_vm3 = vcmp.eq.f32.partialorder %v174_v27, %v182_v39 }
  0xe8   :  { %v184_v41 = vsel %vm183_vm3, -inf, %v141_v20  ;;  %v153_v42 = vrot.slane %v152_v40, 2  ;;  %vm262_vm3 = vcmask 15360  }
  0xe9   :  { %v185_v43 = vrot.slane %v184_v41, 4 }
  0xea   :  { %v154_v44 = vadd.f32 %v153_v42, %v152_v40 }
  0xeb   :  { %v186_v45 = vmax.f32 %v184_v41, %v185_v43 }
  0xec   :  { %v155_v46 = vrot.slane %v154_v44, 1 }
  0xed   :  { %v187_v47 = vrot.slane %v186_v45, 2 }
  0xee   :  { %v156_v48 = vadd.f32 %v155_v46, %v154_v44 }
  0xef   :  { %v188_v49 = vmax.f32 %v186_v45, %v187_v47 }
  0xf0   :  { %334 = vrcp.f32 %v156_v48  ;;  %v168_v63 = vand.u32 2147483648, %v156_v48  ;;  %v166_v2 = vand.u32 2147483647, %v156_v48  ;;  %vm162_vm10 = vweird.f32 %v156_v48 }
  0xf1   :  { %v189_v51 = vrot.slane %v188_v49, 1 }
  0xf2   :  { %v169_v5 = vor.u32 1.1754944e-38, %v168_v63  ;;  %vm167_vm12 = vcmp.eq.f32.partialorder %v166_v2, 8.507059e+37 }
  0xf3   :  { %v190_v52 = vmax.f32 %v188_v49, %v189_v51 }
  0xf5   :  { %vm191_vm5 = vcmp.eq.f32.partialorder %v184_v41, %v190_v52  ;;  %v200_v54 = vsel %vm199_vm4, %v147_v28, %v190_v52 }
  0xf6   :  { %v335_v55 = vpop.eup %334  ;;  %v192_v56 = vsel %vm191_vm5, %v174_v27, 8.0  ;;  %v202_v57 = vsub.f32 %v200_v54, %v147_v28 }
  0xf7   :  { %v193_v58 = vrot.slane %v192_v56, 4  ;;  %v158_v59 = vmul.f32 %v335_v55, %v156_v48  ;;  %vm163_vm8 = vweird.f32 %v335_v55 }
  0xf8   :  { %v203_v60 = vmul.f32 1.442695, %v202_v57  ;;  %vm164_vm11 = vmor %vm162_vm10, %vm163_vm8 }
  0xf9   :  { %v194_v61 = vmin.f32 %v192_v56, %v193_v58  ;;  %v159_v62 = vsub.f32 1.0, %v158_v59 }
  0xfa   :  { %336 = vpow2.f32 %v203_v60 }
  0xfb   :  { %v195_v0 = vrot.slane %v194_v61, 2  ;;  %v160_v1 = vmul.f32 %v335_v55, %v159_v62 }
  0xfd   :  { %v196_v3 = vmin.f32 %v194_v61, %v195_v0  ;;  %v161_v4 = vadd.f32 %v335_v55, %v160_v1 }
  0xff   :  { %v197_v8 = vrot.slane %v196_v3, 1  ;;  %v165_v9 = vsel %vm164_vm11, %v335_v55, %v161_v4 }
 0x100   :  { %v337_v10 = vpop.eup %336  ;;  %v170_v11 = vsel %vm167_vm12, %v169_v5, %v165_v9 }
 0x101   :  { %v205_v12 = vmul.f32 %v337_v10, %v170_v11  ;;  %v241_v13 = vmul.f32 %v319_v7, %v170_v11  ;;  %v198_v14 = vmin.f32 %v196_v3, %v197_v8 }
 0x103   :  { %v207_v15 = vsel %vm206_vm13, %v205_v12, 0.0  ;;  %257 = vmatpush.xpose.msra.mxu1 %v241_v13  ;;  %v201_v16 = vsel %vm199_vm4, %v182_v39, %v198_v14 }
 0x104   :  { %v208_v17 = vrot.slane %v207_v15, 4  ;;  %vm320_vm14 = vcmp.lt.s32.totalorder %v201_v16, 0  ;;  %v321_v18 = vceil.f32 %v201_v16  ;;  %v322_v19 = vfloor.f32 %v201_v16 }
 0x106   :  { %v209_v20 = vadd.f32 %v208_v17, %v207_v15  ;;  %258 = vmatmul.f32.vlgmr.msra.gmra.mxu1 %v499_v36  ;;  %v323_v21 = vsel %vm320_vm14, %v321_v18, %v322_v19 }
 0x107   :  { %v324_v22 = vcvt.f32.s32 %v323_v21 }
 0x108   :  { %v210_v23 = vrot.slane %v209_v20, 2 }
 0x109   :  { %233 = vst [vmem:[#allocation8] sm:$0x3] %v324_v22 }
 0x10a   :  { %v211_v24 = vadd.f32 %v210_v23, %v209_v20  ;;  %285 = dma.vmem_to_hbm [thread:$0]  %s281_s1, 32, %s283_s29, [#allocation9]  }
 0x10c   :  { %v212_v25 = vrot.slane %v211_v24, 1 }
 0x10e   :  { %v213_v26 = vadd.f32 %v212_v25, %v211_v24 }
 0x110   :  { %v214_v27 = vadd.f32 1e-20, %v213_v26 }
 0x112   :  { %338 = vrcp.f32 %v214_v27  ;;  %v226_v31 = vand.u32 2147483648, %v214_v27  ;;  %v224_v33 = vand.u32 2147483647, %v214_v27  ;;  %vm220_vm0 = vweird.f32 %v214_v27 }
 0x114   :  { %v227_v35 = vor.u32 1.1754944e-38, %v226_v31  ;;  %vm225_vm2 = vcmp.eq.f32.partialorder %v224_v33, 8.507059e+37 }
 0x118   :  { %v339_v28 = vpop.eup %338 }
 0x119   :  { %v216_v29 = vmul.f32 %v339_v28, %v214_v27  ;;  %vm221_vm15 = vweird.f32 %v339_v28 }
 0x11a   :  { %vm222_vm1 = vmor %vm220_vm0, %vm221_vm15 }
 0x11b   :  { %v217_v30 = vsub.f32 1.0, %v216_v29 }
 0x11d   :  { %v218_v32 = vmul.f32 %v339_v28, %v217_v30 }
 0x11f   :  { %v219_v34 = vadd.f32 %v339_v28, %v218_v32 }
 0x121   :  { %v223_v36 = vsel %vm222_vm1, %v339_v28, %v219_v34 }
 0x122   :  { %v228_v37 = vsel %vm225_vm2, %v227_v35, %v223_v36 }
 0x123   :  { %v230_v38 = vmul.f32 %v228_v37, %v205_v12 }
 0x125   :  { %231 = vst [vmem:[#allocation7] sm:$0x3] %v230_v38 }
 0x126   :  { %274 = dma.vmem_to_hbm [thread:$0]  %s270_s30, 32, %s272_s7, [#allocation4]  }
 0x183   :  { %v259_v39 = vpop.f32.mrf.mxu1 }
 0x184   :  { %263 = vst.msk [vmem:[%s519_s4] sm:$0xff] %vm262_vm3, %v259_v39 }
 0x185   :  { %440 = dma.done.wait [#allocation4], 32  }
 0x186   :  { %441 = vsyncadd [#allocation4], 4294967264 }
 0x187   :  { %442 = dma.done.wait [#allocation9], 32  }
 0x188   :  { %443 = vsyncadd [#allocation9], 4294967264 }
 0x189   :  { %298 = vsyncpa [#allocation3], 1 }
 0x18a   :  { %299 = vsyncpa [#allocation6], 1 }
 0x18b   :  { %300 = vsyncpa [#allocation4], 1 }
 0x18c   :  { %301 = vsyncpa [#allocation9], 1 }

</bundles_post_ra>
